<compile_context>
chip_gen: v6e
topology: v6e:2x2x1
jax: 0.10.0
libtpu: 0.0.40
codegen_flags: <defaults>
</compile_context>

<pallas_src>
import jax
import jax.numpy as jnp
from jax import lax
from jax.experimental import pallas as pl
from jax.experimental.pallas import tpu as pltpu


def _mlp_kernel(x_ref, w1_ref, w2_ref, vp_ref, o_ref):
    h1_dim = w1_ref.shape[0]
    h2_dim = w2_ref.shape[0]
    dot_dtype = w1_ref.dtype                       # bf16 (default) or f32
    prec = lax.Precision.HIGHEST if dot_dtype == jnp.float32 else None

    # NOTE: for the ragged edge block, lanes past the true batch extent hold
    # undefined data.  Every op below is lane-local along batch (the only
    # reduction is over the sublane/H axis), so garbage stays confined to its
    # own lanes and Pallas discards those lanes at writeback.  Do NOT add any
    # cross-lane (cross-batch) reduction here without masking first.
    x = x_ref[...].astype(dot_dtype)               # (Bt, IN), natural layout
    w1 = w1_ref[...]                               # (H1, IN)  PyTorch (out, in)
    w2 = w2_ref[...]                               # (H2, H1)
    vp = vp_ref[...]                               # (H_pad, 4) packed f32
    b1 = vp[:h1_dim, 0:1]                          # (H1, 1)
    b2 = vp[:h2_dim, 1:2]                          # (H2, 1)
    w3 = vp[:h2_dim, 2:3]                          # (H2, 1)
    b3 = vp[0:1, 3:4]                              # (1, 1)

    # l1 + ReLU: contract IN with IN -> (H1, Bt), batch lane-dense.
    # f32 accumulation on the MXU; bias/ReLU in f32 on the VPU.
    h1 = lax.dot_general(w1, x, (((1,), (1,)), ((), ())),
                         preferred_element_type=jnp.float32, precision=prec)
    h1 = jnp.maximum(h1 + b1, 0.0)                 # (H1, Bt)

    # l2 + Tanh: (H2, H1) x (H1, Bt) -> (H2, Bt); tanh on the EUP in f32.
    h2 = jnp.dot(w2, h1.astype(dot_dtype),
                 preferred_element_type=jnp.float32, precision=prec)
    h2 = jnp.tanh(h2 + b2)                         # (H2, Bt)

    # l3 (out_features == 1): VPU multiply + sublane (XLU) reduce, no MXU pass.
    out = jnp.sum(h2 * w3, axis=0, keepdims=True) + b3    # (1, Bt) lane-dense
    o_ref[...] = out.astype(o_ref.dtype)


def _choose_batch_tile(B, batch_tile, *, min_tiles=2):
    """Pick a lane-aligned batch tile.

    - tiny batches: one full-extent tile (block == array, no alignment needed)
    - otherwise: a multiple of 128 lanes, at least `min_tiles` grid steps so
      the "parallel" axis feeds both TensorCores on v7x, capped at
      `batch_tile` so the VMEM working set stays bounded.
    """
    assert batch_tile % 128 == 0, "batch_tile must be a multiple of 128"
    if B <= 256:
        return B
    bt = pl.cdiv(pl.cdiv(B, min_tiles), 128) * 128
    return max(128, min(batch_tile, bt))


def regression_nn_forward(x, params, *, batch_tile=16384):
    """x: (B, input_size).  params: dict from pack_params().  Returns (B, 1)."""
    B, in_features = x.shape
    w1, w2, vecp = params["w1"], params["w2"], params["vecp"]
    h1_dim, h2_dim = int(w1.shape[0]), int(w2.shape[0])
    assert w1.shape[1] == in_features and w2.shape[1] == h1_dim

    bt = _choose_batch_tile(B, batch_tile)
    grid = (pl.cdiv(B, bt),)                       # ragged edge handled by Pallas

    out_row = pl.pallas_call(
        _mlp_kernel,
        out_shape=jax.ShapeDtypeStruct((1, B), x.dtype),
        grid=grid,
        in_specs=[
            # x streamed per batch tile in its natural (B, IN) layout.
            pl.BlockSpec((bt, in_features), lambda i: (i, 0)),
            # Tiny weights: constant index maps -> resident in VMEM.
            pl.BlockSpec((h1_dim, in_features), lambda i: (0, 0)),
            pl.BlockSpec((h2_dim, h1_dim), lambda i: (0, 0)),
            pl.BlockSpec(vecp.shape, lambda i: (0, 0)),
        ],
        # Lane-dense (1, bt) output row -> unmasked full-width stores.
        out_specs=pl.BlockSpec((1, bt), lambda i: (0, i)),
        compiler_params=pltpu.CompilerParams(
            # Independent batch tiles -> shard across the 2 TCs on v7x.
            dimension_semantics=("parallel",),
            # ~12-16 MiB working set at bt=16K; keep headroom under v7x's
            # 64 MiB physical VMEM.  Cap batch_tile near 16K rather than
            # raising this limit.
            vmem_limit_bytes=32 * 1024 * 1024,
        ),
    )(x, w1, w2, vecp)

    return out_row.reshape(B, 1)


def init_params(key, input_size, hidden_size_1, hidden_size_2):
    """PyTorch nn.Linear default init, weights in (out_features, in_features) layout."""
    ks = jax.random.split(key, 6)

    def lin(kw, kb, fan_in, fan_out):
        bound = 1.0 / jnp.sqrt(jnp.float32(fan_in))
        w = jax.random.uniform(kw, (fan_out, fan_in), jnp.float32, -bound, bound)
        b = jax.random.uniform(kb, (fan_out,), jnp.float32, -bound, bound)
        return w, b

    w1, b1 = lin(ks[0], ks[1], input_size, hidden_size_1)
    w2, b2 = lin(ks[2], ks[3], hidden_size_1, hidden_size_2)
    w3, b3 = lin(ks[4], ks[5], hidden_size_2, 1)
    return w1, b1, w2, b2, w3, b3


def pack_params(w1, b1, w2, b2, w3, b3, *, mxu_bf16=True):
    """Pack small per-feature vectors into one VMEM input; pre-cast matmul weights once.

    mxu_bf16=True: w1/w2 stored bf16 (single-pass MXU operands; f32 accumulation
    in-kernel).  mxu_bf16=False: exact f32 path (precision pinned HIGHEST).
    Biases / w3 row / b3 always stay f32 (VPU math is f32 on all generations).
    """
    h1_dim, h2_dim = w1.shape[0], w2.shape[0]
    h_pad = ((max(h1_dim, h2_dim, 8) + 7) // 8) * 8
    vecp = jnp.zeros((h_pad, 4), jnp.float32)
    vecp = vecp.at[:h1_dim, 0].set(b1)
    vecp = vecp.at[:h2_dim, 1].set(b2)
    vecp = vecp.at[:h2_dim, 2].set(w3[0, :])
    vecp = vecp.at[0, 3].set(b3[0])
    wdt = jnp.bfloat16 if mxu_bf16 else jnp.float32
    return {"w1": w1.astype(wdt), "w2": w2.astype(wdt), "vecp": vecp}


def _reference(x, w1, b1, w2, b2, w3, b3):
    hp = jax.lax.Precision.HIGHEST
    h1 = jnp.maximum(jnp.dot(x, w1.T, precision=hp) + b1, 0.0)
    h2 = jnp.tanh(jnp.dot(h1, w2.T, precision=hp) + b2)
    return jnp.dot(h2, w3.T, precision=hp) + b3


if __name__ == "__main__":
    input_size, hidden_1, hidden_2 = 32, 64, 32

    key = jax.random.PRNGKey(0)
    kx, kx2, kx3, kp = jax.random.split(key, 4)
    w1, b1, w2, b2, w3, b3 = init_params(kp, input_size, hidden_1, hidden_2)
    params_bf16 = pack_params(w1, b1, w2, b2, w3, b3, mxu_bf16=True)   # default path
    params_f32 = pack_params(w1, b1, w2, b2, w3, b3, mxu_bf16=False)   # exact path

    # --- small batch, single full-extent tile ---
    x_small = jax.random.normal(kx, (8, input_size), jnp.float32)
    ref = _reference(x_small, w1, b1, w2, b2, w3, b3)

    out_f32 = jax.block_until_ready(regression_nn_forward(x_small, params_f32))
    assert out_f32.shape == (8, 1), out_f32.shape
    assert jnp.allclose(out_f32, ref, atol=1e-4, rtol=1e-4), "f32 path mismatch"

    out_bf16 = jax.block_until_ready(regression_nn_forward(x_small, params_bf16))
    assert out_bf16.shape == (8, 1), out_bf16.shape
    assert jnp.allclose(out_bf16, ref, atol=5e-2, rtol=5e-2), "bf16 path mismatch"

    # --- ragged multi-tile batch grid (grid=3, Pallas edge-masked last block) ---
    x_big = jax.random.normal(kx2, (300, input_size), jnp.float32)
    ref_big = _reference(x_big, w1, b1, w2, b2, w3, b3)
    out_big = jax.block_until_ready(
        regression_nn_forward(x_big, params_bf16, batch_tile=128))
    assert out_big.shape == (300, 1), out_big.shape
    assert jnp.allclose(out_big, ref_big, atol=5e-2, rtol=5e-2), "grid path mismatch"

    # --- default tile heuristic: >=2 parallel tiles + ragged edge ---
    x_med = jax.random.normal(kx3, (1000, input_size), jnp.float32)
    ref_med = _reference(x_med, w1, b1, w2, b2, w3, b3)
    out_med = jax.block_until_ready(regression_nn_forward(x_med, params_bf16))
    assert out_med.shape == (1000, 1), out_med.shape
    assert jnp.allclose(out_med, ref_med, atol=5e-2, rtol=5e-2), "default tiling mismatch"

    print("KERNEL_OK")
</pallas_src>

<mosaic_0001>
module attributes {stable_mosaic.version = 11 : i64} {
  func.func @_mlp_kernel(%arg0: i32, %arg1: memref<8x32xf32, #tpu.memory_space<vmem>>, %arg2: memref<64x32xf32, #tpu.memory_space<vmem>>, %arg3: memref<32x64xf32, #tpu.memory_space<vmem>>, %arg4: memref<64x4xf32, #tpu.memory_space<vmem>>, %arg5: memref<1x8xf32, #tpu.memory_space<vmem>>) attributes {dimension_semantics = [#tpu.dimension_semantics<parallel>], iteration_bounds = array<i64: 1>, scalar_prefetch = 0 : i64, scratch_operands = 0 : i64, tpu.core_type = #tpu.core_type<tc>, window_params = [{transform_indices = @transform_0, window_bounds = array<i64: 8, 32>}, {pipeline_mode = #tpu.pipeline_mode<synchronous>, transform_indices = @transform_1, window_bounds = array<i64: 64, 32>}, {pipeline_mode = #tpu.pipeline_mode<synchronous>, transform_indices = @transform_2, window_bounds = array<i64: 32, 64>}, {pipeline_mode = #tpu.pipeline_mode<synchronous>, transform_indices = @transform_3, window_bounds = array<i64: 64, 4>}, {transform_indices = @transform_4, window_bounds = array<i64: 1, 8>}]} {
    %c0 = arith.constant 0 : index
    %c0_0 = arith.constant 0 : index
    %0 = vector.load %arg1[%c0, %c0_0] : memref<8x32xf32, #tpu.memory_space<vmem>>, vector<8x32xf32>
    %c0_1 = arith.constant 0 : index
    %c0_2 = arith.constant 0 : index
    %1 = vector.load %arg2[%c0_1, %c0_2] : memref<64x32xf32, #tpu.memory_space<vmem>>, vector<64x32xf32>
    %c0_3 = arith.constant 0 : index
    %c0_4 = arith.constant 0 : index
    %2 = vector.load %arg3[%c0_3, %c0_4] : memref<32x64xf32, #tpu.memory_space<vmem>>, vector<32x64xf32>
    %c0_5 = arith.constant 0 : index
    %c0_6 = arith.constant 0 : index
    %3 = vector.load %arg4[%c0_5, %c0_6] : memref<64x4xf32, #tpu.memory_space<vmem>>, vector<64x4xf32>
    %4 = vector.extract_strided_slice %3 {offsets = [0, 0], sizes = [64, 1], strides = [1, 1]} : vector<64x4xf32> to vector<64x1xf32>
    %5 = vector.extract_strided_slice %3 {offsets = [0, 1], sizes = [32, 1], strides = [1, 1]} : vector<64x4xf32> to vector<32x1xf32>
    %6 = vector.extract_strided_slice %3 {offsets = [0, 2], sizes = [32, 1], strides = [1, 1]} : vector<64x4xf32> to vector<32x1xf32>
    %7 = vector.extract_strided_slice %3 {offsets = [0, 3], sizes = [1, 1], strides = [1, 1]} : vector<64x4xf32> to vector<1x1xf32>
    %cst = arith.constant dense<0.000000e+00> : vector<64x8xf32>
    %8 = tpu.matmul %1, %0, %cst {dimension_numbers = #tpu.dot_dimension_numbers<[1], [1], [0], [0], [0, 0, 1, 0], [], []>, precision = #tpu.contract_precision<fp32>} : vector<64x32xf32>, vector<8x32xf32>, vector<64x8xf32> -> vector<64x8xf32>
    %9 = vector.broadcast %4 : vector<64x1xf32> to vector<64x8xf32>
    %10 = arith.addf %8, %9 : vector<64x8xf32>
    %cst_7 = arith.constant 0.000000e+00 : f32
    %11 = vector.broadcast %cst_7 : f32 to vector<64x8xf32>
    %12 = arith.maximumf %10, %11 : vector<64x8xf32>
    %cst_8 = arith.constant dense<0.000000e+00> : vector<32x8xf32>
    %13 = tpu.matmul %2, %12, %cst_8 {dimension_numbers = #tpu.dot_dimension_numbers<[1], [0], [0], [1], [0, 0, 1, 1], [], []>, precision = #tpu.contract_precision<fp32>} : vector<32x64xf32>, vector<64x8xf32>, vector<32x8xf32> -> vector<32x8xf32>
    %14 = vector.broadcast %5 : vector<32x1xf32> to vector<32x8xf32>
    %15 = arith.addf %13, %14 : vector<32x8xf32>
    %16 = math.tanh %15 : vector<32x8xf32>
    %17 = vector.broadcast %6 : vector<32x1xf32> to vector<32x8xf32>
    %18 = arith.mulf %16, %17 : vector<32x8xf32>
    %cst_9 = arith.constant dense<0.000000e+00> : vector<8xf32>
    %19 = vector.multi_reduction <add>, %18, %cst_9 [0] : vector<32x8xf32> to vector<8xf32>
    %20 = vector.shape_cast %19 : vector<8xf32> to vector<1x8xf32>
    %21 = vector.broadcast %7 : vector<1x1xf32> to vector<1x8xf32>
    %22 = arith.addf %20, %21 : vector<1x8xf32>
    %c0_10 = arith.constant 0 : index
    %c0_11 = arith.constant 0 : index
    %23 = vector.load %arg5[%c0_10, %c0_11] : memref<1x8xf32, #tpu.memory_space<vmem>>, vector<1x8xf32>
    tpu.vector_store %arg5[%c0_10, %c0_11], %22 {strides = array<i32>} : memref<1x8xf32, #tpu.memory_space<vmem>>, vector<1x8xf32>,
    return
  }
  func.func @transform_0(%arg0: i32) -> (i32, i32) {
    %c0_i32 = arith.constant 0 : i32
    %c0_i32_0 = arith.constant 0 : i32
    return %arg0, %c0_i32 : i32, i32
  }
  func.func @transform_1(%arg0: i32) -> (i32, i32) {
    %c0_i32 = arith.constant 0 : i32
    %c0_i32_0 = arith.constant 0 : i32
    %c0_i32_1 = arith.constant 0 : i32
    return %c0_i32, %c0_i32_0 : i32, i32
  }
  func.func @transform_2(%arg0: i32) -> (i32, i32) {
    %c0_i32 = arith.constant 0 : i32
    %c0_i32_0 = arith.constant 0 : i32
    %c0_i32_1 = arith.constant 0 : i32
    return %c0_i32, %c0_i32_0 : i32, i32
  }
  func.func @transform_3(%arg0: i32) -> (i32, i32) {
    %c0_i32 = arith.constant 0 : i32
    %c0_i32_0 = arith.constant 0 : i32
    %c0_i32_1 = arith.constant 0 : i32
    return %c0_i32, %c0_i32_0 : i32, i32
  }
  func.func @transform_4(%arg0: i32) -> (i32, i32) {
    %c0_i32 = arith.constant 0 : i32
    %c0_i32_0 = arith.constant 0 : i32
    return %c0_i32, %arg0 : i32, i32
  }
}

</mosaic_0001>

<bundles_post_ra>
// kernel: tpu_custom_call.1
= control target key start
LH: loop header
LB: loop body
LE: loop exit
PB: predicated region body
PF: predicated region fallthrough
CT: control target
= control target key end

     0   :  { %vm79_vm0 = vcmask 261120   ;;  %v2000_v9 = vmov 0   ;;  %s2474_s0 = inlined_call_operand.vmem [shape: f32[8,32], index: 0, kind: input, shape index: {}]   ;;  %s2475_s1 = inlined_call_operand.vmem [shape: f32[64,32], index: 1, kind: input, shape index: {}]   ;;  %s2476_s2 = inlined_call_operand.vmem [shape: f32[32,64], index: 2, kind: input, shape index: {}]   ;;  %s2477_s3 = inlined_call_operand.vmem [shape: f32[64,4], index: 3, kind: input, shape index: {}]   ;;  %s2478_s4 = inlined_call_operand.hbm [shape: f32[1,8], index: 4, kind: output, shape index: {}]  }
   0x1   :  { %v18_v0 = vld [vmem:[%s2474_s0] sm:$0xff]  ;;  %v20_v2 = vld [vmem:[%s2475_s1 + $0x8] sm:$0xff]  ;;  %v21_v6 = vld [vmem:[%s2475_s1 + $0x10] sm:$0xff]  ;;  %1964 = vset.pattern.permute.xlu1 %v2000_v9  ;;  %1963 = vset.pattern.permute.xlu0 %v2000_v9 }
   0x2   :  { %v19_v1 = vld [vmem:[%s2475_s1] sm:$0xff]  ;;  %v105_v3 = vsel %vm79_vm0, %v18_v0, 0  ;;  %v84_v5 = vsel %vm79_vm0, %v20_v2, 0  ;;  %v22_v7 = vld [vmem:[%s2475_s1 + $0x18] sm:$0xff]  ;;  %v87_v13 = vsel %vm79_vm0, %v21_v6, 0  ;;  %v24_v14 = vld [vmem:[%s2475_s1 + $0x28] sm:$0xff] }
   0x3   :  { %v81_v4 = vsel %vm79_vm0, %v19_v1, 0  ;;  %v23_v8 = vld [vmem:[%s2475_s1 + $0x20] sm:$0xff]  ;;  %v2051_v10 = vand.u32 4294901760, %v105_v3  ;;  %v2055_v12 = vand.u32 4294901760, %v84_v5  ;;  %v25_v15 = vld [vmem:[%s2475_s1 + $0x30] sm:$0xff]  ;;  %v2064_v16 = vand.u32 4294901760, %v87_v13 }
   0x4   :  { %v2053_v11 = vand.u32 4294901760, %v81_v4  ;;  %v90_v17 = vsel %vm79_vm0, %v22_v7, 0  ;;  %v93_v18 = vsel %vm79_vm0, %v23_v8, 0  ;;  %v96_v19 = vsel %vm79_vm0, %v24_v14, 0  ;;  %v38_v20 = vld [vmem:[%s2477_s3 + $0x38] sm:$0xff]  ;;  %v36_v25 = vld [vmem:[%s2477_s3 + $0x28] sm:$0xff] }
   0x5   :  { %1742 = vmatprep.subr.mxu0 %v2051_v10  ;;  %v285_v22 = vsub.f32 %v105_v3, %v2051_v10  ;;  %v2078_v23 = vsub.f32 %v84_v5, %v2055_v12  ;;  %v2081_v24 = vand.u32 4294901760, %v90_v17  ;;  %v2088_v26 = vsub.f32 %v87_v13, %v2064_v16  ;;  %76 = vperm.xlu0 %1963, %v38_v20   ;;  %v37_v34 = vld [vmem:[%s2477_s3 + $0x30] sm:$0xff] }
   0x6   :  { %v2074_v21 = vsub.f32 %v81_v4, %v2053_v11  ;;  %1758 = vmatprep.mubr.f32.mxu1 %v2053_v11  ;;  %1743 = vmatpush3.xpose.msra.mxu0 %v2051_v10  ;;  %v2090_v27 = vand.u32 4294901760, %v93_v18  ;;  %v2092_v28 = vand.u32 4294901760, %v96_v19  ;;  %v99_v29 = vsel %vm79_vm0, %v25_v15, 0 }
   0x7   :  { %v2096_v31 = vand.u32 4294901760, %v285_v22  ;;  %v185_v32 = vand.u32 4294901760, %v2078_v23  ;;  %1770 = vmatprep.subr.mxu0 %v285_v22  ;;  %v2100_v33 = vsub.f32 %v90_v17, %v2081_v24  ;;  %66 = vperm.xlu1 %1964, %v36_v25  }
   0x8   :  { %v175_v30 = vand.u32 4294901760, %v2074_v21 }
   0x9   :  { %9 = vsyncpa [#allocation3], 0  ;;  %v195_v35 = vand.u32 4294901760, %v2088_v26  ;;  %v2107_v36 = vsub.f32 %v93_v18, %v2090_v27  ;;  %v2110_v37 = vsub.f32 %v96_v19, %v2092_v28  ;;  %v2112_v38 = vand.u32 4294901760, %v99_v29  ;;  %v35_v39 = vld [vmem:[%s2477_s3 + $0x20] sm:$0xff]  ;;  %v26_v48 = vld [vmem:[%s2475_s1 + $0x38] sm:$0xff]  ;;  %71 = vperm.xlu0 %1963, %v37_v34  }
   0xa   :  { %v176_v40 = vsub.f32 %v2074_v21, %v175_v30  ;;  %v287_v41 = vsub.f32 %v285_v22, %v2096_v31  ;;  %v186_v42 = vsub.f32 %v2078_v23, %v185_v32  ;;  %v205_v43 = vand.u32 4294901760, %v2100_v33  ;;  %v2152_v60 = vld [vmem:[%s2477_s3 + $0x18] sm:$0xff]  ;;  %v2163_v0 = vld [vmem:[%s2477_s3 + $0x10] sm:$0xff]  ;;  %v2169_v3 = vld [vmem:[%s2477_s3 + $0x8] sm:$0xff] }
   0xb   :  { %v196_v44 = vsub.f32 %v2088_v26, %v195_v35  ;;  %v215_v45 = vand.u32 4294901760, %v2107_v36  ;;  %v225_v46 = vand.u32 4294901760, %v2110_v37  ;;  %v2131_v47 = vsub.f32 %v99_v29, %v2112_v38  ;;  %61 = vperm.xlu1 %1964, %v35_v39   ;;  %v2179_v6 = vld [vmem:[%s2477_s3] sm:$0xff] }
   0xc   :  { %v177_v49 = vand.u32 4294901760, %v176_v40  ;;  %v288_v50 = vand.u32 4294901760, %v287_v41  ;;  %v187_v51 = vand.u32 4294901760, %v186_v42  ;;  %v206_v52 = vsub.f32 %v2100_v33, %v205_v43  ;;  %v27_v8 = vld [vmem:[%s2476_s2] sm:$0xff] }
   0xd   :  { %v197_v53 = vand.u32 4294901760, %v196_v44  ;;  %v216_v54 = vsub.f32 %v2107_v36, %v215_v45  ;;  %v235_v55 = vand.u32 4294901760, %v2131_v47  ;;  %v102_v56 = vsel %vm79_vm0, %v26_v48, 0  ;;  %56 = vperm.xlu0 %1963, %v2152_v60  }
   0xe   :  { %1744 = vmatprep.mubr.f32.mxu0 %v177_v49  ;;  %1756 = vmatprep.subr.mxu1 %v288_v50  ;;  %v207_v57 = vand.u32 4294901760, %v206_v52  ;;  %v226_v58 = vsub.f32 %v2110_v37, %v225_v46  ;;  %v2147_v59 = vand.u32 4294901760, %v102_v56  ;;  %vm878_vm1 = vcmask 523264  }
   0xf   :  { %1745 = vmatmul.mubr.f32.vlgmr.msra.gmra.mxu0 %v187_v51  ;;  %1757 = vmatpush3.xpose.msra.mxu1 %v288_v50  ;;  %v217_v61 = vand.u32 4294901760, %v216_v54  ;;  %v236_v62 = vsub.f32 %v2131_v47, %v235_v55  ;;  %v880_v9 = vsel %vm878_vm1, %v27_v8, 0  ;;  %v2001_v15 = vmov 1  }
  0x10   :  { %1771 = vmatpush3.xpose.msra.mxu0 %v285_v22  ;;  %1747 = vmatprep.mubr.f32.mxu0 %v197_v53  ;;  %v244_v63 = vsub.f32 %v102_v56, %v2147_v59  ;;  %v227_v1 = vand.u32 4294901760, %v226_v58  ;;  %v2002_v20 = vmov 2   ;;  %vm1581_vm2 = vcmask 64512  }
  0x11   :  { %1784 = vmatprep.subr.mxu1 %v2051_v10  ;;  %1798 = vmatprep.subr.mxu0 %v2096_v31  ;;  %v237_v4 = vand.u32 4294901760, %v236_v62  ;;  %vm1600_vm3 = vcmask 57344  }
  0x12   :  { %1759 = vmatmul.mubr.f32.vlgmr.msra.gmra.mxu1 %v2055_v12  ;;  %v245_v2 = vand.u32 4294901760, %v244_v63  ;;  %51 = vperm.xlu1 %1964, %v2163_v0  }
  0x13   :  { %1748 = vmatmul.mubr.f32.gmra.mxu0 %v207_v57  ;;  %1785 = vmatpush3.xpose.msra.mxu1 %v2051_v10 }
  0x14   :  { %1761 = vmatprep.mubr.f32.mxu1 %v2064_v16  ;;  %1750 = vmatprep.mubr.f32.mxu0 %v217_v61  ;;  %v246_v5 = vsub.f32 %v244_v63, %v245_v2 }
  0x15   :  { %1812 = vmatprep.subr.mxu1 %v2051_v10  ;;  %46 = vperm.xlu0 %1963, %v2169_v3  }
  0x16   :  { %1762 = vmatmul.mubr.f32.gmra.mxu1 %v2081_v24  ;;  %v247_v7 = vand.u32 4294901760, %v246_v5  ;;  %41 = vperm.xlu1 %1964, %v2179_v6  }
  0x17   :  { %1751 = vmatmul.mubr.f32.gmra.mxu0 %v227_v1  ;;  %1764 = vmatprep.mubr.f32.mxu1 %v2090_v27 }
  0x18   :  { %1753 = vmatprep.mubr.f32.mxu0 %v237_v4 }
  0x19   :  { %1965 = vset.pattern.permute.xlu0 %v2001_v15 }
  0x1a   :  { %1765 = vmatmul.mubr.f32.gmra.mxu1 %v2092_v28  ;;  %1966 = vset.pattern.permute.xlu1 %v2001_v15 }
  0x1b   :  { %1754 = vmatmul.mubr.f32.gmra.mxu0 %v247_v7  ;;  %1767 = vmatprep.mubr.f32.mxu1 %v2112_v38 }
  0x1c   :  { %1772 = vmatprep.mubr.f32.mxu0 %v2074_v21  ;;  %863 = vperm.xlu0 %1965, %v2179_v6  }
  0x1d   :  { %867 = vperm.xlu1 %1966, %v2169_v3  }
  0x1e   :  { %1768 = vmatmul.mubr.f32.gmra.mxu1 %v2147_v59 }
  0x1f   :  { %1773 = vmatmul.mubr.f32.vlgmr.msra.gmra.mxu0 %v2078_v23  ;;  %1786 = vmatprep.mubr.f32.mxu1 %v175_v30 }
  0x20   :  { %1799 = vmatpush3.xpose.msra.mxu0 %v2096_v31  ;;  %1775 = vmatprep.mubr.f32.mxu0 %v2088_v26  ;;  %v2003_v26 = vmov 3  }
  0x21   :  { %875 = vperm.xlu0 %1965, %v2152_v60   ;;  %871 = vperm.xlu1 %1966, %v2163_v0  }
  0x22   :  { %1787 = vmatmul.mubr.f32.vlgmr.msra.gmra.mxu1 %v185_v32 }
  0x23   :  { %1776 = vmatmul.mubr.f32.gmra.mxu0 %v2100_v33  ;;  %1813 = vmatpush3.xpose.msra.mxu1 %v2051_v10  ;;  %v2227_v10 = vand.u32 4294901760, %v880_v9 }
  0x24   :  { %1789 = vmatprep.mubr.f32.mxu1 %v195_v35  ;;  %1778 = vmatprep.mubr.f32.mxu0 %v2107_v36 }
  0x25   :  { %1967 = vset.pattern.permute.xlu1 %v2002_v20  ;;  %1968 = vset.pattern.permute.xlu0 %v2002_v20 }
  0x26   :  { %1790 = vmatmul.mubr.f32.gmra.mxu1 %v205_v43  ;;  %1562 = vperm.xlu1 %1967, %v2179_v6  }
  0x27   :  { %1779 = vmatmul.mubr.f32.gmra.mxu0 %v2110_v37  ;;  %1792 = vmatprep.mubr.f32.mxu1 %v215_v45 }
  0x28   :  { %1781 = vmatprep.mubr.f32.mxu0 %v2131_v47  ;;  %1566 = vperm.xlu0 %1968, %v2169_v3  }
  0x2a   :  { %1793 = vmatmul.mubr.f32.gmra.mxu1 %v225_v46  ;;  %1570 = vperm.xlu1 %1967, %v2163_v0  }
  0x2b   :  { %1782 = vmatmul.mubr.f32.gmra.mxu0 %v244_v63  ;;  %1795 = vmatprep.mubr.f32.mxu1 %v235_v55 }
  0x2c   :  { %1800 = vmatprep.mubr.f32.mxu0 %v2053_v11  ;;  %1969 = vset.pattern.permute.xlu0 %v2003_v26 }
  0x2d   :  { %1596 = vperm.xlu0 %1969, %v2179_v6  }
  0x2e   :  { %1796 = vmatmul.mubr.f32.gmra.mxu1 %v245_v2  ;;  %1574 = vperm.xlu1 %1967, %v2152_v60  }
  0x2f   :  { %1801 = vmatmul.mubr.f32.vlgmr.msra.gmra.mxu0 %v2055_v12  ;;  %1814 = vmatprep.mubr.f32.mxu1 %v2053_v11  ;;  %v2230_v11 = vsub.f32 %v880_v9, %v2227_v10 }
  0x30   :  { %1803 = vmatprep.mubr.f32.mxu0 %v2064_v16 }
  0x32   :  { %1815 = vmatmul.mubr.f32.vlgmr.msra.gmra.mxu1 %v2055_v12  ;;  %v966_v12 = vand.u32 4294901760, %v2230_v11 }
  0x33   :  { %1804 = vmatmul.mubr.f32.gmra.mxu0 %v2081_v24  ;;  %1817 = vmatprep.mubr.f32.mxu1 %v2064_v16 }
  0x34   :  { %1806 = vmatprep.mubr.f32.mxu0 %v2090_v27  ;;  %v967_v13 = vsub.f32 %v2230_v11, %v966_v12 }
  0x36   :  { %1818 = vmatmul.mubr.f32.gmra.mxu1 %v2081_v24  ;;  %v968_v14 = vand.u32 4294901760, %v967_v13 }
  0x37   :  { %1807 = vmatmul.mubr.f32.gmra.mxu0 %v2092_v28  ;;  %1820 = vmatprep.mubr.f32.mxu1 %v2090_v27 }
  0x38   :  { %1809 = vmatprep.mubr.f32.mxu0 %v2112_v38 }
  0x3a   :  { %1821 = vmatmul.mubr.f32.gmra.mxu1 %v2092_v28 }
  0x3b   :  { %1810 = vmatmul.mubr.f32.gmra.mxu0 %v2147_v59  ;;  %1823 = vmatprep.mubr.f32.mxu1 %v2112_v38 }
  0x3c   :  { %1842 = vmatprep.mubr.f32.mxu0 %v968_v14 }
  0x3e   :  { %1824 = vmatmul.mubr.f32.gmra.mxu1 %v2147_v59 }
  0x3f   :  { %1864 = vmatprep.mubr.f32.mxu1 %v2227_v10 }
  0x80   :  { %v77_v27 = vpop.permute.xlu0 %76 }
  0x82   :  { %v67_v30 = vpop.permute.xlu1 %66 }
  0x84   :  { %v72_v35 = vpop.permute.xlu0 %71 }
  0x86   :  { %v62_v38 = vpop.permute.xlu1 %61 }
  0x88   :  { %v57_v43 = vpop.permute.xlu0 %56 }
  0x8d   :  { %v52_v46 = vpop.permute.xlu1 %51 }
  0x90   :  { %v47_v51 = vpop.permute.xlu0 %46 }
  0x91   :  { %v42_v56 = vpop.permute.xlu1 %41 }
  0xcf   :  { %v1746_v16 = vpop.f32.mrf.mxu0 }
  0xd0   :  { %v190_v59 = vadd.f32 %v1746_v16, %v47_v51 }
  0xd1   :  { %v179_v17 = vpop.f32.mrf.mxu0 }
  0xd2   :  { %v1760_v18 = vpop.f32.mrf.mxu1  ;;  %v180_v0 = vadd.f32 %v179_v17, %v42_v56 }
  0xd3   :  { %v1749_v19 = vpop.f32.mrf.mxu0  ;;  %v332_v7 = vadd.f32 %v1760_v18, %v190_v59 }
  0xd4   :  { %v2241_v21 = vpop.f32.mrf.mxu1  ;;  %v210_v52 = vadd.f32 %v1749_v19, %v57_v43 }
  0xd5   :  { %v199_v22 = vpop.f32.mrf.mxu0  ;;  %v326_v16 = vadd.f32 %v2241_v21, %v180_v0 }
  0xd6   :  { %v1763_v23 = vpop.f32.mrf.mxu1  ;;  %v200_v57 = vadd.f32 %v199_v22, %v52_v46 }
  0xd7   :  { %v1752_v24 = vpop.f32.mrf.mxu0  ;;  %v344_v62 = vadd.f32 %v1763_v23, %v210_v52 }
  0xd8   :  { %v337_v25 = vpop.f32.mrf.mxu1  ;;  %v230_v54 = vadd.f32 %v1752_v24, %v67_v30 }
  0xd9   :  { %v219_v28 = vpop.f32.mrf.mxu0  ;;  %v338_v4 = vadd.f32 %v337_v25, %v200_v57 }
  0xda   :  { %v1766_v29 = vpop.f32.mrf.mxu1  ;;  %v220_v60 = vadd.f32 %v219_v28, %v62_v38 }
  0xdb   :  { %v1755_v31 = vpop.f32.mrf.mxu0  ;;  %v356_v1 = vadd.f32 %v1766_v29, %v230_v54 }
  0xdc   :  { %v349_v32 = vpop.f32.mrf.mxu1  ;;  %v250_v2 = vadd.f32 %v1755_v31, %v77_v27 }
  0xdd   :  { %v239_v33 = vpop.f32.mrf.mxu0  ;;  %v350_v8 = vadd.f32 %v349_v32, %v220_v60 }
  0xde   :  { %v1769_v34 = vpop.f32.mrf.mxu1  ;;  %v240_v9 = vadd.f32 %v239_v33, %v72_v35 }
  0xdf   :  { %v1774_v36 = vpop.f32.mrf.mxu0  ;;  %v368_v20 = vadd.f32 %v1769_v34, %v250_v2 }
  0xe0   :  { %v361_v37 = vpop.f32.mrf.mxu1  ;;  %v449_v22 = vadd.f32 %v1774_v36, %v332_v7 }
  0xe1   :  { %v441_v39 = vpop.f32.mrf.mxu0  ;;  %v362_v27 = vadd.f32 %v361_v37, %v240_v9 }
  0xe2   :  { %v1788_v40 = vpop.f32.mrf.mxu1  ;;  %v442_v28 = vadd.f32 %v441_v39, %v326_v16 }
  0xe3   :  { %v1777_v41 = vpop.f32.mrf.mxu0  ;;  %v573_v33 = vadd.f32 %v1788_v40, %v449_v22 }
  0xe4   :  { %v564_v42 = vpop.f32.mrf.mxu1  ;;  %v463_v5 = vadd.f32 %v1777_v41, %v344_v62 }
  0xe5   :  { %v455_v44 = vpop.f32.mrf.mxu0  ;;  %v565_v36 = vadd.f32 %v564_v42, %v442_v28 }
  0xe6   :  { %v1791_v45 = vpop.f32.mrf.mxu1  ;;  %v456_v15 = vadd.f32 %v455_v44, %v338_v4 }
  0xe7   :  { %v1780_v47 = vpop.f32.mrf.mxu0  ;;  %v589_v17 = vadd.f32 %v1791_v45, %v463_v5 }
  0xe8   :  { %v580_v48 = vpop.f32.mrf.mxu1  ;;  %v477_v13 = vadd.f32 %v1780_v47, %v356_v1 }
  0xe9   :  { %v469_v49 = vpop.f32.mrf.mxu0  ;;  %v581_v18 = vadd.f32 %v580_v48, %v456_v15  ;;  %v28_v48 = vld [vmem:[%s2476_s2 + $0x8] sm:$0xff] }
  0xea   :  { %v1794_v50 = vpop.f32.mrf.mxu1  ;;  %v470_v23 = vadd.f32 %v469_v49, %v350_v8  ;;  %v883_v59 = vsel %vm878_vm1, %v28_v48, 0 }
  0xeb   :  { %v1783_v53 = vpop.f32.mrf.mxu0  ;;  %v605_v25 = vadd.f32 %v1794_v50, %v477_v13  ;;  %v2257_v7 = vand.u32 4294901760, %v883_v59 }
  0xec   :  { %v596_v55 = vpop.f32.mrf.mxu1  ;;  %v491_v29 = vadd.f32 %v1783_v53, %v368_v20 }
  0xed   :  { %v483_v58 = vpop.f32.mrf.mxu0  ;;  %v597_v35 = vadd.f32 %v596_v55, %v470_v23  ;;  %v29_v23 = vld [vmem:[%s2476_s2 + $0x10] sm:$0xff] }
  0xee   :  { %v1797_v61 = vpop.f32.mrf.mxu1  ;;  %v484_v38 = vadd.f32 %v483_v58, %v362_v27 }
  0xef   :  { %v1802_v63 = vpop.f32.mrf.mxu0  ;;  %v621_v44 = vadd.f32 %v1797_v61, %v491_v29  ;;  %v30_v29 = vld [vmem:[%s2476_s2 + $0x18] sm:$0xff]  ;;  %s2004_s2 = smov [#allocation2]  }
  0xf0   :  { %v612_v3 = vpop.f32.mrf.mxu1  ;;  %v701_v46 = vadd.f32 %v1802_v63, %v573_v33  ;;  %s1608_s27 = sshll.u32 %s2004_s2, 4  ;;  %s1609_s27 = int_to_ptr.vmem [resolvable:$true] %s1608_s27 }
  0xf1   :  { %v694_v6 = vpop.f32.mrf.mxu0  ;;  %v613_v50 = vadd.f32 %v612_v3, %v484_v38  ;;  %s1978_s28 = scalar_lea.vmem %s1609_s27, 16  ;;  %s1982_s29 = scalar_lea.vmem %s1609_s27, 32 }
  0xf2   :  { %v1816_v14 = vpop.f32.mrf.mxu1  ;;  %v695_v40 = vadd.f32 %v694_v6, %v565_v36  ;;  %p1979_p0 = scmp.ne.s32.totalorder %s1609_s27, %s1978_s28  ;;  %p1983_p1 = scmp.lt.s32.totalorder %s1609_s27, %s1609_s27 }
  0xf3   :  { %v1805_v19 = vpop.f32.mrf.mxu0  ;;  %v815_v42 = vadd.f32 %v1816_v14, %v701_v46  ;;  %p1984_p2 = scmp.lt.s32.totalorder %s1982_s29, %s1978_s28 }
  0xf4   :  { %v808_v24 = vpop.f32.mrf.mxu1  ;;  %v713_v31 = vadd.f32 %v1805_v19, %v589_v17  ;;  %v2284_v17 = vsub.f32 %v883_v59, %v2257_v7 }
  0xf5   :  { %v706_v26 = vpop.f32.mrf.mxu0  ;;  %v809_v0 = vadd.f32 %v808_v24, %v695_v40  ;;  %v855_v6 = vmax.f32 %v815_v42, 0.0  ;;  %p1985_p3 = por %p1984_p2, %p1983_p1 }
  0xf6   :  { %v1819_v30 = vpop.f32.mrf.mxu1  ;;  %v707_v21 = vadd.f32 %v706_v26, %v581_v18  ;;  %v886_v18 = vsel %vm878_vm1, %v29_v23, 0 }
  0xf7   :  { %v1808_v32 = vpop.f32.mrf.mxu0  ;;  %v827_v37 = vadd.f32 %v1819_v30, %v713_v31  ;;  %v854_v15 = vmax.f32 %v809_v0, 0.0  ;;  %v2280_v24 = vand.u32 4294901760, %v855_v6  ;;  %v2333_v46 = vand.u32 4294901760, %v886_v18  ;;  %p1986_p4 = pnand %p1985_p3, %p1979_p0 }
  0xf8   :  { %v725_v41 = vadd.f32 %v1808_v32, %v605_v25  ;;  %v820_v43 = vpop.f32.mrf.mxu1 }
  0xf9   :  { %v718_v34 = vpop.f32.mrf.mxu0  ;;  %v821_v53 = vadd.f32 %v820_v43, %v707_v21  ;;  %v857_v60 = vmax.f32 %v827_v37, 0.0  ;;  %v2302_v30 = vand.u32 4294901760, %v854_v15  ;;  %v2319_v38 = vsub.f32 %v855_v6, %v2280_v24 }
  0xfa   :  { %v719_v45 = vadd.f32 %v718_v34, %v597_v35  ;;  %v1822_v47 = vpop.f32.mrf.mxu1  ;;  %v889_v43 = vsel %vm878_vm1, %v30_v29, 0 }
  0xfb   :  { %v839_v39 = vadd.f32 %v1822_v47, %v725_v41  ;;  %v1811_v49 = vpop.f32.mrf.mxu0  ;;  %v856_v2 = vmax.f32 %v821_v53, 0.0  ;;  %v2259_v8 = vand.u32 4294901760, %v857_v60  ;;  %v976_v41 = vand.u32 4294901760, %v2284_v17 }
  0xfc   :  { %v737_v51 = vadd.f32 %v1811_v49, %v621_v44  ;;  %v832_v52 = vpop.f32.mrf.mxu1  ;;  %v2348_v48 = vand.u32 4294901760, %v889_v43 }
  0xfd   :  { %v859_v54 = vmax.f32 %v839_v39, 0.0  ;;  %v833_v55 = vadd.f32 %v832_v52, %v719_v45  ;;  %v730_v56 = vpop.f32.mrf.mxu0  ;;  %v2266_v19 = vand.u32 4294901760, %v856_v2  ;;  %v2287_v26 = vsub.f32 %v857_v60, %v2259_v8 }
  0xfe   :  { %v731_v57 = vadd.f32 %v730_v56, %v613_v50  ;;  %v1825_v58 = vpop.f32.mrf.mxu1  ;;  %v2336_v45 = vsub.f32 %v854_v15, %v2302_v30  ;;  %v977_v49 = vsub.f32 %v2284_v17, %v976_v41  ;;  %v2368_v42 = vsub.f32 %v889_v43, %v2348_v48 }
  0xff   :  { %v2253_v61 = vand.u32 4294901760, %v859_v54  ;;  %v858_v62 = vmax.f32 %v833_v55, 0.0  ;;  %v851_v63 = vadd.f32 %v1825_v58, %v737_v51  ;;  %v2307_v31 = vsub.f32 %v856_v2, %v2266_v19 }
 0x100   :  { %v844_v1 = vpop.f32.mrf.mxu1  ;;  %v2330_v44 = vand.u32 4294901760, %v2287_v26  ;;  %v2354_v51 = vand.u32 4294901760, %v2319_v38  ;;  %v2364_v55 = vsub.f32 %v886_v18, %v2333_v46  ;;  %v978_v56 = vand.u32 4294901760, %v977_v49 }
 0x101   :  { %v2255_v3 = vand.u32 4294901760, %v858_v62  ;;  %v861_v4 = vmax.f32 %v851_v63, 0.0  ;;  %v845_v5 = vadd.f32 %v844_v1, %v731_v57  ;;  %v2262_v9 = vsub.f32 %v859_v54, %v2253_v61 }
 0x102   :  { %v2342_v39 = vand.u32 4294901760, %v2307_v31  ;;  %v1052_v40 = vsub.f32 %v2287_v26, %v2330_v44  ;;  %v2361_v54 = vand.u32 4294901760, %v2336_v45  ;;  %v1066_v58 = vsub.f32 %v2319_v38, %v2354_v51 }
 0x103   :  { %v2264_v13 = vand.u32 4294901760, %v861_v4  ;;  %v860_v14 = vmax.f32 %v845_v5, 0.0  ;;  %v2269_v16 = vsub.f32 %v858_v62, %v2255_v3  ;;  %v2297_v25 = vand.u32 4294901760, %v2262_v9 }
 0x104   :  { %v1059_v53 = vsub.f32 %v2307_v31, %v2342_v39  ;;  %v1053_v57 = vand.u32 4294901760, %v1052_v40  ;;  %v1073_v60 = vsub.f32 %v2336_v45, %v2361_v54  ;;  %v986_v62 = vand.u32 4294901760, %v2364_v55 }
 0x105   :  { %v2272_v20 = vsub.f32 %v861_v4, %v2264_v13  ;;  %v2274_v22 = vand.u32 4294901760, %v860_v14  ;;  %1826 = vmatprep.subr.mxu0 %v2264_v13  ;;  %v2316_v35 = vand.u32 4294901760, %v2269_v16  ;;  %v1038_v36 = vsub.f32 %v2262_v9, %v2297_v25 }
 0x106   :  { %1827 = vmatpush3.msra.mxu0 %v2264_v13  ;;  %v1060_v59 = vand.u32 4294901760, %v1059_v53  ;;  %v996_v63 = vand.u32 4294901760, %v2368_v42  ;;  %v1067_v0 = vand.u32 4294901760, %v1066_v58  ;;  %v1074_v1 = vand.u32 4294901760, %v1073_v60 }
 0x107   :  { %v2290_v27 = vsub.f32 %v860_v14, %v2274_v22  ;;  %1828 = vmatprep.subr.mxu0 %v2274_v22  ;;  %v2294_v28 = vand.u32 4294901760, %v2272_v20  ;;  %v1045_v37 = vsub.f32 %v2269_v16, %v2316_v35  ;;  %v1039_v50 = vand.u32 4294901760, %v1038_v36 }
 0x108   :  { %1829 = vmatpush3.msra.mxu0 %v2274_v22  ;;  %v987_v2 = vsub.f32 %v2364_v55, %v986_v62  ;;  %v997_v4 = vsub.f32 %v2368_v42, %v996_v63 }
 0x109   :  { %1830 = vmatprep.subr.mxu0 %v2253_v61  ;;  %v1024_v32 = vsub.f32 %v2272_v20, %v2294_v28  ;;  %v2313_v33 = vand.u32 4294901760, %v2290_v27  ;;  %v1046_v52 = vand.u32 4294901760, %v1045_v37 }
 0x10a   :  { %1831 = vmatpush3.msra.mxu0 %v2253_v61  ;;  %v988_v5 = vand.u32 4294901760, %v987_v2  ;;  %v998_v6 = vand.u32 4294901760, %v997_v4 }
 0x10b   :  { %1832 = vmatprep.subr.mxu0 %v2255_v3  ;;  %v1025_v21 = vand.u32 4294901760, %v1024_v32  ;;  %v1031_v34 = vsub.f32 %v2290_v27, %v2313_v33 }
 0x10c   :  { %1833 = vmatpush3.msra.mxu0 %v2255_v3 }
 0x10d   :  { %1834 = vmatprep.subr.mxu0 %v2259_v8  ;;  %1848 = vmatprep.subr.mxu1 %v1025_v21  ;;  %v1032_v47 = vand.u32 4294901760, %v1031_v34 }
 0x10e   :  { %1835 = vmatpush3.msra.mxu0 %v2259_v8  ;;  %1849 = vmatpush3.msra.mxu1 %v1025_v21 }
 0x10f   :  { %1836 = vmatprep.subr.mxu0 %v2266_v19  ;;  %1850 = vmatprep.subr.mxu1 %v1032_v47 }
 0x110   :  { %1837 = vmatpush3.msra.mxu0 %v2266_v19  ;;  %1851 = vmatpush3.msra.mxu1 %v1032_v47 }
 0x111   :  { %1838 = vmatprep.subr.mxu0 %v2280_v24  ;;  %1852 = vmatprep.subr.mxu1 %v1039_v50 }
 0x112   :  { %1839 = vmatpush3.msra.mxu0 %v2280_v24  ;;  %1853 = vmatpush3.msra.mxu1 %v1039_v50 }
 0x113   :  { %1840 = vmatprep.subr.mxu0 %v2302_v30  ;;  %1854 = vmatprep.subr.mxu1 %v1046_v52 }
 0x114   :  { %1841 = vmatpush3.msra.mxu0 %v2302_v30  ;;  %1855 = vmatpush3.msra.mxu1 %v1046_v52 }
 0x115   :  { %1856 = vmatprep.subr.mxu1 %v1053_v57  ;;  %1870 = vmatprep.subr.mxu0 %v2272_v20 }
 0x116   :  { %1843 = vmatmul.mubr.f32.vlgmr.msra.gmra.mxu0 %v978_v56  ;;  %1857 = vmatpush3.msra.mxu1 %v1053_v57 }
 0x117   :  { %1871 = vmatpush3.msra.mxu0 %v2272_v20  ;;  %1858 = vmatprep.subr.mxu1 %v1060_v59  ;;  %v868_v20 = vpop.permute.xlu1 %867 }
 0x118   :  { %1872 = vmatprep.subr.mxu0 %v2290_v27  ;;  %1859 = vmatpush3.msra.mxu1 %v1060_v59 }
 0x119   :  { %1873 = vmatpush3.msra.mxu0 %v2290_v27  ;;  %1860 = vmatprep.subr.mxu1 %v1067_v0 }
 0x11a   :  { %1874 = vmatprep.subr.mxu0 %v2262_v9  ;;  %1861 = vmatpush3.msra.mxu1 %v1067_v0 }
 0x11b   :  { %1875 = vmatpush3.msra.mxu0 %v2262_v9  ;;  %1862 = vmatprep.subr.mxu1 %v1074_v1 }
 0x11c   :  { %1876 = vmatprep.subr.mxu0 %v2269_v16  ;;  %1863 = vmatpush3.msra.mxu1 %v1074_v1 }
 0x11d   :  { %1877 = vmatpush3.msra.mxu0 %v2269_v16  ;;  %1865 = vmatmul.mubr.f32.vlgmr.msra.gmra.mxu1 %v2257_v7 }
 0x11e   :  { %1878 = vmatprep.subr.mxu0 %v2287_v26  ;;  %1892 = vmatprep.subr.mxu1 %v2264_v13 }
 0x11f   :  { %1879 = vmatpush3.msra.mxu0 %v2287_v26  ;;  %1893 = vmatpush3.msra.mxu1 %v2264_v13 }
 0x120   :  { %1880 = vmatprep.subr.mxu0 %v2307_v31  ;;  %1894 = vmatprep.subr.mxu1 %v2274_v22 }
 0x121   :  { %1845 = vmatprep.mubr.f32.mxu0 %v988_v5  ;;  %1881 = vmatpush3.msra.mxu0 %v2307_v31 }
 0x122   :  { %1895 = vmatpush3.msra.mxu1 %v2274_v22  ;;  %1846 = vmatmul.mubr.f32.gmra.mxu0 %v998_v6 }
 0x123   :  { %1882 = vmatprep.subr.mxu0 %v2319_v38  ;;  %1896 = vmatprep.subr.mxu1 %v2253_v61 }
 0x124   :  { %1883 = vmatpush3.msra.mxu0 %v2319_v38  ;;  %1897 = vmatpush3.msra.mxu1 %v2253_v61 }
 0x125   :  { %1884 = vmatprep.subr.mxu0 %v2336_v45  ;;  %1898 = vmatprep.subr.mxu1 %v2255_v3 }
 0x126   :  { %1885 = vmatpush3.msra.mxu0 %v2336_v45  ;;  %1886 = vmatprep.mubr.f32.mxu0 %v2230_v11 }
 0x127   :  { %1899 = vmatpush3.msra.mxu1 %v2255_v3  ;;  %1887 = vmatmul.mubr.f32.vlgmr.msra.gmra.mxu0 %v2284_v17  ;;  %v872_v17 = vpop.permute.xlu1 %871 }
 0x128   :  { %1900 = vmatprep.subr.mxu1 %v2259_v8  ;;  %1914 = vmatprep.subr.mxu0 %v2294_v28 }
 0x129   :  { %1901 = vmatpush3.msra.mxu1 %v2259_v8  ;;  %1915 = vmatpush3.msra.mxu0 %v2294_v28 }
 0x12a   :  { %1902 = vmatprep.subr.mxu1 %v2266_v19  ;;  %1916 = vmatprep.subr.mxu0 %v2313_v33 }
 0x12b   :  { %1867 = vmatprep.mubr.f32.mxu1 %v2333_v46  ;;  %1903 = vmatpush3.msra.mxu1 %v2266_v19  ;;  %v1563_v57 = vpop.permute.xlu1 %1562 }
 0x12c   :  { %1917 = vmatpush3.msra.mxu0 %v2313_v33  ;;  %1868 = vmatmul.mubr.f32.gmra.mxu1 %v2348_v48 }
 0x12d   :  { %1904 = vmatprep.subr.mxu1 %v2280_v24  ;;  %1918 = vmatprep.subr.mxu0 %v2297_v25 }
 0x12e   :  { %1889 = vmatprep.mubr.f32.mxu0 %v2364_v55  ;;  %1905 = vmatpush3.msra.mxu1 %v2280_v24 }
 0x12f   :  { %1919 = vmatpush3.msra.mxu0 %v2297_v25  ;;  %1906 = vmatprep.subr.mxu1 %v2302_v30  ;;  %v1571_v59 = vpop.permute.xlu1 %1570 }
 0x130   :  { %1890 = vmatmul.mubr.f32.gmra.mxu0 %v2368_v42  ;;  %1920 = vmatprep.subr.mxu0 %v2316_v35 }
 0x131   :  { %1907 = vmatpush3.msra.mxu1 %v2302_v30  ;;  %1908 = vmatprep.mubr.f32.mxu1 %v966_v12 }
 0x132   :  { %1921 = vmatpush3.msra.mxu0 %v2316_v35  ;;  %1909 = vmatmul.mubr.f32.vlgmr.msra.gmra.mxu1 %v976_v41 }
 0x133   :  { %1922 = vmatprep.subr.mxu0 %v2330_v44  ;;  %1936 = vmatprep.subr.mxu1 %v2264_v13  ;;  %v1575_v5 = vpop.permute.xlu1 %1574 }
 0x134   :  { %1923 = vmatpush3.msra.mxu0 %v2330_v44  ;;  %1937 = vmatpush3.msra.mxu1 %v2264_v13 }
 0x135   :  { %1924 = vmatprep.subr.mxu0 %v2342_v39  ;;  %1938 = vmatprep.subr.mxu1 %v2274_v22 }
 0x136   :  { %1911 = vmatprep.mubr.f32.mxu1 %v986_v62  ;;  %1925 = vmatpush3.msra.mxu0 %v2342_v39 }
 0x137   :  { %1939 = vmatpush3.msra.mxu1 %v2274_v22  ;;  %1926 = vmatprep.subr.mxu0 %v2354_v51 }
 0x138   :  { %1912 = vmatmul.mubr.f32.gmra.mxu1 %v996_v63  ;;  %1940 = vmatprep.subr.mxu1 %v2253_v61 }
 0x139   :  { %1927 = vmatpush3.msra.mxu0 %v2354_v51  ;;  %1941 = vmatpush3.msra.mxu1 %v2253_v61 }
 0x13a   :  { %1928 = vmatprep.subr.mxu0 %v2361_v54  ;;  %1942 = vmatprep.subr.mxu1 %v2255_v3 }
 0x13b   :  { %1929 = vmatpush3.msra.mxu0 %v2361_v54  ;;  %1930 = vmatprep.mubr.f32.mxu0 %v2227_v10 }
 0x13c   :  { %1943 = vmatpush3.msra.mxu1 %v2255_v3  ;;  %1931 = vmatmul.mubr.f32.vlgmr.msra.gmra.mxu0 %v2257_v7 }
 0x13d   :  { %1944 = vmatprep.subr.mxu1 %v2259_v8  ;;  %1933 = vmatprep.mubr.f32.mxu0 %v2333_v46 }
 0x13e   :  { %1945 = vmatpush3.msra.mxu1 %v2259_v8  ;;  %1952 = vmatprep.mubr.f32.mxu1 %v2227_v10 }
 0x13f   :  { %1946 = vmatprep.subr.mxu1 %v2266_v19 }
 0x140   :  { %1947 = vmatpush3.msra.mxu1 %v2266_v19  ;;  %1934 = vmatmul.mubr.f32.gmra.mxu0 %v2348_v48  ;;  %v864_v19 = vpop.permute.xlu0 %863 }
 0x141   :  { %1948 = vmatprep.subr.mxu1 %v2280_v24 }
 0x142   :  { %1949 = vmatpush3.msra.mxu1 %v2280_v24 }
 0x143   :  { %1950 = vmatprep.subr.mxu1 %v2302_v30 }
 0x144   :  { %1951 = vmatpush3.msra.mxu1 %v2302_v30  ;;  %v876_v23 = vpop.permute.xlu0 %875 }
 0x145   :  { %1953 = vmatmul.mubr.f32.vlgmr.msra.gmra.mxu1 %v2257_v7 }
 0x146   :  { %1955 = vmatprep.mubr.f32.mxu1 %v2333_v46 }
 0x148   :  { %v1567_v60 = vpop.permute.xlu0 %1566 }
 0x149   :  { %1956 = vmatmul.mubr.f32.gmra.mxu1 %v2348_v48 }
 0x1d6   :  { %v1844_v10 = vpop.f32.mrf.mxu0 }
 0x1d7   :  { %v981_v7 = vadd.f32 %v1844_v10, %v868_v20  ;;  %v1597_v20 = vpop.permute.xlu0 %1596 }
 0x1d8   :  { %v970_v11 = vpop.f32.mrf.mxu0 }
 0x1d9   :  { %v971_v27 = vadd.f32 %v970_v11, %v864_v19 }
 0x1dd   :  { %v1866_v61 = vpop.f32.mrf.mxu1 }
 0x1de   :  { %v1118_v29 = vadd.f32 %v1866_v61, %v981_v7 }
 0x1df   :  { %v1111_v8 = vpop.f32.mrf.mxu1 }
 0x1e0   :  { %v1112_v32 = vadd.f32 %v1111_v8, %v971_v27 }
 0x1e2   :  { %v1847_v12 = vpop.f32.mrf.mxu0 }
 0x1e3   :  { %v1001_v28 = vadd.f32 %v1847_v12, %v876_v23 }
 0x1e4   :  { %v990_v3 = vpop.f32.mrf.mxu0 }
 0x1e5   :  { %v991_v30 = vadd.f32 %v990_v3, %v872_v17 }
 0x1e7   :  { %v1888_v9 = vpop.f32.mrf.mxu0 }
 0x1e8   :  { %v1225_v33 = vadd.f32 %v1888_v9, %v1118_v29 }
 0x1e9   :  { %v1217_v14 = vpop.f32.mrf.mxu0 }
 0x1ea   :  { %v1218_v38 = vadd.f32 %v1217_v14, %v1112_v32 }
 0x1ec   :  { %v1869_v13 = vpop.f32.mrf.mxu1 }
 0x1ed   :  { %v1130_v35 = vadd.f32 %v1869_v13, %v1001_v28 }
 0x1ee   :  { %v1123_v15 = vpop.f32.mrf.mxu1 }
 0x1ef   :  { %v1124_v41 = vadd.f32 %v1123_v15, %v991_v30 }
 0x1f0   :  { %v1891_v16 = vpop.f32.mrf.mxu0 }
 0x1f1   :  { %v1239_v36 = vadd.f32 %v1891_v16, %v1130_v35 }
 0x1f2   :  { %v1910_v22 = vpop.f32.mrf.mxu1  ;;  %v1231_v24 = vpop.f32.mrf.mxu0 }
 0x1f3   :  { %v1328_v43 = vadd.f32 %v1910_v22, %v1225_v33  ;;  %v1232_v47 = vadd.f32 %v1231_v24, %v1124_v41 }
 0x1f4   :  { %v1319_v26 = vpop.f32.mrf.mxu1 }
 0x1f5   :  { %v1320_v44 = vadd.f32 %v1319_v26, %v1218_v38 }
 0x1f8   :  { %v1913_v18 = vpop.f32.mrf.mxu1 }
 0x1f9   :  { %v1344_v37 = vadd.f32 %v1913_v18, %v1239_v36 }
 0x1fa   :  { %v1335_v21 = vpop.f32.mrf.mxu1 }
 0x1fb   :  { %v1336_v40 = vadd.f32 %v1335_v21, %v1232_v47 }
 0x1fc   :  { %v1932_v25 = vpop.f32.mrf.mxu0 }
 0x1fd   :  { %v1445_v46 = vadd.f32 %v1932_v25, %v1328_v43 }
 0x1fe   :  { %v1438_v31 = vpop.f32.mrf.mxu0 }
 0x1ff   :  { %v1439_v39 = vadd.f32 %v1438_v31, %v1320_v44 }
 0x200   :  { %v1935_v34 = vpop.f32.mrf.mxu0 }
 0x201   :  { %v1457_v51 = vadd.f32 %v1935_v34, %v1344_v37 }
 0x202   :  { %v1450_v48 = vpop.f32.mrf.mxu0 }
 0x203   :  { %v1451_v54 = vadd.f32 %v1450_v48, %v1336_v40 }
 0x205   :  { %v1954_v45 = vpop.f32.mrf.mxu1 }
 0x206   :  { %v1542_v49 = vadd.f32 %v1954_v45, %v1445_v46 }
 0x207   :  { %v1535_v50 = vpop.f32.mrf.mxu1 }
 0x208   :  { %1970 = vtanh.f32 %v1542_v49  ;;  %v1536_v52 = vadd.f32 %v1535_v50, %v1439_v39 }
 0x209   :  { %v1957_v53 = vpop.f32.mrf.mxu1 }
 0x20a   :  { %1972 = vtanh.f32 %v1536_v52  ;;  %v1554_v55 = vadd.f32 %v1957_v53, %v1457_v51 }
 0x20b   :  { %v1547_v56 = vpop.f32.mrf.mxu1 }
 0x20c   :  { %1974 = vtanh.f32 %v1554_v55  ;;  %v1548_v42 = vadd.f32 %v1547_v56, %v1451_v54 }
 0x20e   :  { %1976 = vtanh.f32 %v1548_v42 }
 0x215   :  { %v1971_v58 = vpop.eup %1970 }
 0x216   :  { %v1578_v0 = vmul.f32 %v1971_v58, %v1567_v60 }
 0x217   :  { %v1973_v62 = vpop.eup %1972 }
 0x218   :  { %v1577_v63 = vmul.f32 %v1973_v62, %v1563_v57  ;;  %v1583_v10 = vsel %vm1581_vm2, %v1578_v0, 0.0 }
 0x219   :  { %v1975_v1 = vpop.eup %1974 }
 0x21a   :  { %v1582_v2 = vsel %vm1581_vm2, %v1577_v63, 0.0  ;;  %v1580_v11 = vmul.f32 %v1975_v1, %v1575_v5 }
 0x21b   :  { %v1977_v4 = vpop.eup %1976  ;;  %v1584_v12 = vadd.f32 %v1583_v10, %v1582_v2 }
 0x21c   :  { %v1579_v6 = vmul.f32 %v1977_v4, %v1571_v59  ;;  %v1587_v8 = vsel %vm1581_vm2, %v1580_v11, 0.0 }
 0x21e   :  { %v1585_v61 = vsel %vm1581_vm2, %v1579_v6, 0.0 }
 0x21f   :  { %v1586_v3 = vadd.f32 %v1585_v61, %v1584_v12 }
 0x221   :  { %v1588_v9 = vadd.f32 %v1587_v8, %v1586_v3 }
 0x223   :  { %v1589_v13 = vrot.slane %v1588_v9, 4 }
 0x225   :  { %v1590_v14 = vadd.f32 %v1589_v13, %v1588_v9 }
 0x227   :  { %v1591_v15 = vrot.slane %v1590_v14, 2 }
 0x229   :  { %v1592_v19 = vadd.f32 %v1591_v15, %v1590_v14 }
 0x22b   :  { %v1593_v16 = vrot.slane %v1592_v19, 1 }
 0x22d   :  { %v1594_v22 = vadd.f32 %v1593_v16, %v1592_v19 }
 0x22f   :  { %v1599_v23 = vadd.f32 %v1597_v20, %v1594_v22 }
 0x231   :  { %1601 = vst.msk [vmem:[#allocation2] sm:$0x1] %vm1600_vm3, %v1599_v23 }
 0x232   :  { %1989 = shalt.err (!%p1986_p4)
}
 0x233   :  { %1611 = dma.vmem_to_hbm [thread:$0]  %s1609_s27, 16, %s2478_s4, [#allocation3]  }
 0x234   :  { %1998 = dma.done.wait [#allocation3], 16  }
 0x235   :  { %1999 = vsyncadd [#allocation3], 4294967280 }
 0x236   :  { %1615 = vsyncpa [#allocation3], 1 }

</bundles_post_ra>
